<compile_context>
chip_gen: v6e
topology: v6e:2x2x1
jax: 0.10.0
libtpu: 0.0.40
codegen_flags: <defaults>
</compile_context>

<pallas_src>
import math

import jax
import jax.numpy as jnp
from jax.experimental import pallas as pl
from jax.experimental.pallas import tpu as pltpu

# Model / problem sizes (small, consistent with the module's __init__).
VOCAB = 16          # vocab_size
EMB = 32            # emb_size (LSTM input_size == hidden_size == emb_size)
HID = 32            # hidden_size of the `syn` Linear
SEQ = 8             # sequence length of `state`
GATES = 4 * EMB     # 128 -> exactly one lane axis

# Row offsets inside the packed bf16 weight slab (lane width 128).
R_WIH = 0                      # rows [  0, 32): W_ih^T, gate-scaled
R_WHH = R_WIH + EMB            # rows [ 32, 64): W_hh^T, gate-scaled
R_SYN = R_WHH + EMB            # rows [ 64, 96): lanes [0,32)=syn_ws^T, [32,64)=syn_wa^T
R_EMB = R_SYN + EMB            # rows [ 96,129): stacked [emb_state; emb_action], lanes [0,32)
N_EMB_ROWS = 2 * VOCAB + 1     # 33
EMB_ROWS_PAD = 48              # pad to a multiple of 16 (bf16 sublane packing)
WSLAB_ROWS = R_EMB + EMB_ROWS_PAD   # 144

# Row meaning of the small f32 parameter slab (4, 128).
P_BIAS = 0   # fused (b_ih + b_hh), gate-scaled
P_MISC = 1   # lanes [0,32)=syn_b, [32,64)=out_w, [64,96)=out_b broadcast, rest 0
P_AFFA = 2   # gate-affine scale  [0.5,0.5,1.0,0.5] per 32-lane group
P_AFFB = 3   # gate-affine offset [0.5,0.5,0.0,0.5] per 32-lane group


def rnn_regression_kernel(ids_ref, wslab_ref, pslab_ref, out_ref):
    # ---------------- off-critical-path prologue ----------------
    # Fused one-hot gather: SEQ state embeddings + the action embedding in a
    # single MXU matmul against the stacked [emb_state; emb_action] table.
    ids = ids_ref[...]                                              # (SEQ+1, 1) i32
    onehot = (
        ids == jax.lax.broadcasted_iota(jnp.int32, (SEQ + 1, N_EMB_ROWS), 1)
    ).astype(jnp.bfloat16)                                          # (SEQ+1, 33)
    table = wslab_ref[R_EMB:R_EMB + N_EMB_ROWS, 0:EMB]              # (33, 32) bf16
    emb_all = jnp.dot(onehot, table,
                      preferred_element_type=jnp.float32)           # (SEQ+1, EMB) f32
    emb_all = emb_all.astype(jnp.bfloat16)
    x_all = emb_all[0:SEQ, :]                                       # (SEQ, EMB)
    vec_action = emb_all[SEQ:SEQ + 1, :]                            # (1, EMB)

    # Hoisted, gate-scaled input projection for every timestep (bias fused).
    w_ih = wslab_ref[R_WIH:R_WIH + EMB, :]                          # (32, 128) bf16
    xproj = (
        jnp.dot(x_all, w_ih, preferred_element_type=jnp.float32)
        + pslab_ref[P_BIAS:P_BIAS + 1, :]
    )                                                               # (SEQ, 128) f32

    # Action branch of `syn` is loop-independent: compute it up front.
    syn_wa = wslab_ref[R_SYN:R_SYN + EMB, EMB:2 * EMB]              # (32, 32) bf16
    syn_partial = (
        jnp.dot(vec_action, syn_wa, preferred_element_type=jnp.float32)
        + pslab_ref[P_MISC:P_MISC + 1, 0:HID]
    )                                                               # (1, HID) f32

    # Hoisted per-lane affine constants: sigmoid(x) = 0.5*tanh(x/2) + 0.5 on
    # the i/f/o lane groups, plain tanh on the g group (the x/2 pre-scale is
    # already folded into the weights/bias offline).
    aff_a = pslab_ref[P_AFFA:P_AFFA + 1, :]                         # (1, 128)
    aff_b = pslab_ref[P_AFFB:P_AFFB + 1, :]                         # (1, 128)

    w_hh = wslab_ref[R_WHH:R_WHH + EMB, :]                          # (32, 128) bf16

    # ---------------- serial LSTM recurrence ----------------
    h = jnp.zeros((1, EMB), jnp.float32)
    c = jnp.zeros((1, EMB), jnp.float32)
    for t in range(SEQ):  # SEQ=8, fully unrolled
        pre = (
            jnp.dot(h.astype(jnp.bfloat16), w_hh,
                    preferred_element_type=jnp.float32)
            + xproj[t:t + 1, :]
        )                                                           # (1, 128)
        act = aff_a * jnp.tanh(pre) + aff_b   # ONE EUP push for all 4 gates
        i_g = act[:, 0 * EMB:1 * EMB]
        f_g = act[:, 1 * EMB:2 * EMB]
        g_g = act[:, 2 * EMB:3 * EMB]
        o_g = act[:, 3 * EMB:4 * EMB]
        c = f_g * c + i_g * g_g
        h = o_g * jnp.tanh(c)                 # second EUP push per step

    # ---------------- epilogue ----------------
    syn_ws = wslab_ref[R_SYN:R_SYN + EMB, 0:EMB]                    # (32, 32) bf16
    vec = (
        jnp.dot(h.astype(jnp.bfloat16), syn_ws,
                preferred_element_type=jnp.float32)
        + syn_partial
    )
    vec = jnp.maximum(vec, 0.0)                                     # ReLU

    # Final (HID -> 1) projection: VPU multiply + lane reduction; out.bias is
    # pre-broadcast to 32 lanes so pred lands replicated across a lane group.
    out_w = pslab_ref[P_MISC:P_MISC + 1, HID:2 * HID]               # (1, 32)
    out_b = pslab_ref[P_MISC:P_MISC + 1, 2 * HID:3 * HID]           # (1, 32) bcast
    pred_vec = jnp.sum(vec * out_w, axis=-1, keepdims=True) + out_b  # (1, 32)

    # Pack the three results into one lane-dense (1, 128) output vreg:
    # lanes [0,32)=h, [32,64)=c, [64,96)=pred (replicated), [96,128)=0.
    out_ref[...] = jnp.concatenate(
        [h, c, pred_vec, jnp.zeros((1, EMB), jnp.float32)], axis=1)


def init_params(key):
    """Deterministic parameter init mirroring the module's __init__ shapes
    (PyTorch layouts, f32)."""
    ks = jax.random.split(key, 10)
    uni = lambda k, shape, a: jax.random.uniform(k, shape, jnp.float32, -a, a)

    stdv_lstm = 1.0 / math.sqrt(EMB)
    return dict(
        emb_state=uni(ks[0], (VOCAB + 1, EMB), 0.1),
        emb_action=uni(ks[1], (VOCAB, EMB), 0.1),
        w_ih=uni(ks[2], (4 * EMB, EMB), stdv_lstm),   # PyTorch LSTM layout, gates i,f,g,o
        w_hh=uni(ks[3], (4 * EMB, EMB), stdv_lstm),
        b_ih=uni(ks[4], (4 * EMB,), stdv_lstm),
        b_hh=uni(ks[5], (4 * EMB,), stdv_lstm),
        syn_w=uni(ks[6], (HID, 2 * EMB), 0.1),
        syn_b=uni(ks[7], (HID,), 1.0 / math.sqrt(2 * EMB)),
        out_w=uni(ks[8], (1, HID), 0.1),
        out_b=uni(ks[9], (1,), 1.0 / math.sqrt(HID)),
    )


def prepare_params(params):
    """One-time re-layout of PyTorch-layout params into two packed kernel
    slabs.  Runs once at setup; the jitted forward takes the slabs directly,
    so no transpose / cast / pack XLA ops sit on the inference path."""
    f32 = jnp.float32
    bf16 = jnp.bfloat16

    # Per-lane gate scale (the x/2 of the tanh-based sigmoid), gate order i,f,g,o.
    gate_scale = jnp.concatenate([
        jnp.full((EMB,), 0.5, f32), jnp.full((EMB,), 0.5, f32),
        jnp.ones((EMB,), f32), jnp.full((EMB,), 0.5, f32)])          # (128,)
    aff_a = gate_scale                                               # [0.5,0.5,1,0.5]
    aff_b = jnp.concatenate([
        jnp.full((EMB,), 0.5, f32), jnp.full((EMB,), 0.5, f32),
        jnp.zeros((EMB,), f32), jnp.full((EMB,), 0.5, f32)])         # (128,)

    w_ih_t_s = (params["w_ih"].T * gate_scale[None, :]).astype(bf16)  # (32, 128)
    w_hh_t_s = (params["w_hh"].T * gate_scale[None, :]).astype(bf16)  # (32, 128)
    b_s = ((params["b_ih"] + params["b_hh"]) * gate_scale).astype(f32)  # (128,)

    syn_ws_t = params["syn_w"][:, :EMB].T.astype(bf16)               # (32, 32)
    syn_wa_t = params["syn_w"][:, EMB:].T.astype(bf16)               # (32, 32)
    syn_rows = jnp.concatenate(
        [syn_ws_t, syn_wa_t, jnp.zeros((EMB, 2 * EMB), bf16)], axis=1)  # (32, 128)

    emb_tab = jnp.concatenate(
        [params["emb_state"], params["emb_action"]], axis=0).astype(bf16)  # (33, 32)
    emb_rows = jnp.zeros((EMB_ROWS_PAD, GATES), bf16)
    emb_rows = emb_rows.at[:N_EMB_ROWS, :EMB].set(emb_tab)           # (48, 128)

    wslab = jnp.concatenate([w_ih_t_s, w_hh_t_s, syn_rows, emb_rows], axis=0)
    assert wslab.shape == (WSLAB_ROWS, GATES)

    misc_row = jnp.concatenate([
        params["syn_b"].astype(f32),                                 # lanes [0,32)
        params["out_w"].reshape(HID).astype(f32),                    # lanes [32,64)
        jnp.full((EMB,), params["out_b"][0], f32),                   # lanes [64,96)
        jnp.zeros((EMB,), f32)])                                     # lanes [96,128)
    pslab = jnp.stack([b_s, misc_row, aff_a, aff_b]).astype(f32)     # (4, 128)

    return dict(wslab=wslab, pslab=pslab)


@jax.jit
def rnn_regression_forward(state_ids, action_id, kp):
    # Pack state ids and the (table-offset) action id into one int32 column.
    ids = jnp.concatenate([
        state_ids.reshape(SEQ).astype(jnp.int32),
        action_id.reshape(1).astype(jnp.int32) + (VOCAB + 1),
    ]).reshape(SEQ + 1, 1)

    vmem = pl.BlockSpec(memory_space=pltpu.MemorySpace.VMEM)
    packed = pl.pallas_call(
        rnn_regression_kernel,
        out_shape=jax.ShapeDtypeStruct((1, GATES), jnp.float32),
        in_specs=[vmem, vmem, vmem],
        out_specs=vmem,
    )(ids, kp["wslab"], kp["pslab"])

    h = packed[:, 0:EMB]
    c = packed[:, EMB:2 * EMB]
    pred = packed[:, 2 * EMB:2 * EMB + 1]
    # Match PyTorch hidden shapes (num_layers=1, batch=1): (1, 1, EMB)
    return pred, (h.reshape(1, 1, EMB), c.reshape(1, 1, EMB))


def reference_forward(state_ids, action_id, params):
    """Pure-JAX f32 reference of the PyTorch forward (lstm branch)."""
    emb = params["emb_state"][state_ids]                 # (SEQ, EMB)
    w_ih, w_hh = params["w_ih"], params["w_hh"]
    b = params["b_ih"] + params["b_hh"]
    h = jnp.zeros((1, EMB), jnp.float32)
    c = jnp.zeros((1, EMB), jnp.float32)
    for t in range(SEQ):
        x = emb[t][None, :]
        gates = x @ w_ih.T + h @ w_hh.T + b[None, :]
        i = jax.nn.sigmoid(gates[:, 0 * EMB:1 * EMB])
        f = jax.nn.sigmoid(gates[:, 1 * EMB:2 * EMB])
        g = jnp.tanh(gates[:, 2 * EMB:3 * EMB])
        o = jax.nn.sigmoid(gates[:, 3 * EMB:4 * EMB])
        c = f * c + i * g
        h = o * jnp.tanh(c)
    vec_action = params["emb_action"][action_id]         # (1, EMB)
    vec = jnp.concatenate([h, vec_action], axis=1)       # (1, 2*EMB)
    vec = jax.nn.relu(vec @ params["syn_w"].T + params["syn_b"][None, :])
    pred = vec @ params["out_w"].T + params["out_b"][None, :]
    return pred, (h.reshape(1, 1, EMB), c.reshape(1, 1, EMB))


if __name__ == "__main__":
    key = jax.random.PRNGKey(0)
    kp_key, ks, ka = jax.random.split(key, 3)

    params = init_params(kp_key)
    kernel_params = prepare_params(params)   # one-time re-layout, off the call path

    # `state` is a list of token indices in [0, vocab_size] (table has vocab+1
    # rows); `action` is a single index in [0, vocab_size).
    state_ids = jax.random.randint(ks, (SEQ,), 0, VOCAB + 1, dtype=jnp.int32)
    action_id = jax.random.randint(ka, (1,), 0, VOCAB, dtype=jnp.int32)

    (pred, (h_n, c_n)) = rnn_regression_forward(state_ids, action_id, kernel_params)
    jax.block_until_ready((pred, h_n, c_n))

    ref_pred, (ref_h, ref_c) = reference_forward(state_ids, action_id, params)
    assert pred.shape == (1, 1) and h_n.shape == (1, 1, EMB) and c_n.shape == (1, 1, EMB)
    # bf16 MXU operands + tanh-based sigmoid: compare against the f32 reference
    # with a bf16-appropriate tolerance (per the perf-review correctness note).
    assert jnp.allclose(pred, ref_pred, atol=2e-2, rtol=2e-2)
    assert jnp.allclose(h_n, ref_h, atol=2e-2, rtol=2e-2)
    assert jnp.allclose(c_n, ref_c, atol=2e-2, rtol=2e-2)

    print("KERNEL_OK")
</pallas_src>

<mosaic_0001>
module attributes {stable_mosaic.version = 11 : i64} {
  func.func @rnn_regression_kernel(%arg0: memref<9x1xi32, #tpu.memory_space<vmem>>, %arg1: memref<144x128xbf16, #tpu.memory_space<vmem>>, %arg2: memref<4x128xf32, #tpu.memory_space<vmem>>, %arg3: memref<1x128xf32, #tpu.memory_space<vmem>>) attributes {dimension_semantics = [], scalar_prefetch = 0 : i64, scratch_operands = 0 : i64, tpu.core_type = #tpu.core_type<tc>} {
    %c0 = arith.constant 0 : index
    %c0_0 = arith.constant 0 : index
    %0 = vector.load %arg0[%c0, %c0_0] : memref<9x1xi32, #tpu.memory_space<vmem>>, vector<9x1xi32>
    %1 = tpu.iota {dimensions = array<i32: 1>} : vector<9x33xi32>
    %2 = vector.broadcast %0 : vector<9x1xi32> to vector<9x33xi32>
    %3 = arith.cmpi eq, %2, %1 : vector<9x33xi32>
    %4 = arith.extui %3 : vector<9x33xi1> to vector<9x33xi32>
    %5 = arith.sitofp %4 : vector<9x33xi32> to vector<9x33xf32>
    %6 = arith.truncf %5 : vector<9x33xf32> to vector<9x33xbf16>
    %c96 = arith.constant 96 : index
    %c0_1 = arith.constant 0 : index
    %7 = vector.load %arg1[%c96, %c0_1] : memref<144x128xbf16, #tpu.memory_space<vmem>>, vector<33x32xbf16>
    %cst = arith.constant dense<0.000000e+00> : vector<9x32xf32>
    %8 = tpu.matmul %6, %7, %cst {dimension_numbers = #tpu.dot_dimension_numbers<[1], [0], [0], [1], [0, 0, 1, 1], [], []>} : vector<9x33xbf16>, vector<33x32xbf16>, vector<9x32xf32> -> vector<9x32xf32>
    %9 = arith.truncf %8 : vector<9x32xf32> to vector<9x32xbf16>
    %10 = vector.extract_strided_slice %9 {offsets = [0, 0], sizes = [8, 32], strides = [1, 1]} : vector<9x32xbf16> to vector<8x32xbf16>
    %11 = vector.extract_strided_slice %9 {offsets = [8, 0], sizes = [1, 32], strides = [1, 1]} : vector<9x32xbf16> to vector<1x32xbf16>
    %c0_2 = arith.constant 0 : index
    %c0_3 = arith.constant 0 : index
    %12 = vector.load %arg1[%c0_2, %c0_3] : memref<144x128xbf16, #tpu.memory_space<vmem>>, vector<32x128xbf16>
    %cst_4 = arith.constant dense<0.000000e+00> : vector<8x128xf32>
    %13 = tpu.matmul %10, %12, %cst_4 {dimension_numbers = #tpu.dot_dimension_numbers<[1], [0], [0], [1], [0, 0, 1, 1], [], []>} : vector<8x32xbf16>, vector<32x128xbf16>, vector<8x128xf32> -> vector<8x128xf32>
    %c0_5 = arith.constant 0 : index
    %c0_6 = arith.constant 0 : index
    %14 = vector.load %arg2[%c0_5, %c0_6] : memref<4x128xf32, #tpu.memory_space<vmem>>, vector<1x128xf32>
    %15 = vector.broadcast %14 : vector<1x128xf32> to vector<8x128xf32>
    %16 = arith.addf %13, %15 : vector<8x128xf32>
    %c64 = arith.constant 64 : index
    %c32 = arith.constant 32 : index
    %17 = vector.load %arg1[%c64, %c32] : memref<144x128xbf16, #tpu.memory_space<vmem>>, vector<32x32xbf16>
    %cst_7 = arith.constant dense<0.000000e+00> : vector<1x32xf32>
    %18 = tpu.matmul %11, %17, %cst_7 {dimension_numbers = #tpu.dot_dimension_numbers<[1], [0], [0], [1], [0, 0, 1, 1], [], []>} : vector<1x32xbf16>, vector<32x32xbf16>, vector<1x32xf32> -> vector<1x32xf32>
    %c1 = arith.constant 1 : index
    %c0_8 = arith.constant 0 : index
    %19 = vector.load %arg2[%c1, %c0_8] : memref<4x128xf32, #tpu.memory_space<vmem>>, vector<1x32xf32>
    %20 = arith.addf %18, %19 : vector<1x32xf32>
    %c2 = arith.constant 2 : index
    %c0_9 = arith.constant 0 : index
    %21 = vector.load %arg2[%c2, %c0_9] : memref<4x128xf32, #tpu.memory_space<vmem>>, vector<1x128xf32>
    %c3 = arith.constant 3 : index
    %c0_10 = arith.constant 0 : index
    %22 = vector.load %arg2[%c3, %c0_10] : memref<4x128xf32, #tpu.memory_space<vmem>>, vector<1x128xf32>
    %c32_11 = arith.constant 32 : index
    %c0_12 = arith.constant 0 : index
    %23 = vector.load %arg1[%c32_11, %c0_12] : memref<144x128xbf16, #tpu.memory_space<vmem>>, vector<32x128xbf16>
    %cst_13 = arith.constant 0.000000e+00 : f32
    %24 = vector.broadcast %cst_13 : f32 to vector<1x32xf32>
    %cst_14 = arith.constant 0.000000e+00 : f32
    %25 = vector.broadcast %cst_14 : f32 to vector<1x32xf32>
    %26 = arith.truncf %24 : vector<1x32xf32> to vector<1x32xbf16>
    %cst_15 = arith.constant dense<0.000000e+00> : vector<1x128xf32>
    %27 = tpu.matmul %26, %23, %cst_15 {dimension_numbers = #tpu.dot_dimension_numbers<[1], [0], [0], [1], [0, 0, 1, 1], [], []>} : vector<1x32xbf16>, vector<32x128xbf16>, vector<1x128xf32> -> vector<1x128xf32>
    %28 = vector.extract_strided_slice %16 {offsets = [0, 0], sizes = [1, 128], strides = [1, 1]} : vector<8x128xf32> to vector<1x128xf32>
    %29 = arith.addf %27, %28 : vector<1x128xf32>
    %30 = math.tanh %29 : vector<1x128xf32>
    %31 = arith.mulf %21, %30 : vector<1x128xf32>
    %32 = arith.addf %31, %22 : vector<1x128xf32>
    %33 = vector.extract_strided_slice %32 {offsets = [0, 0], sizes = [1, 32], strides = [1, 1]} : vector<1x128xf32> to vector<1x32xf32>
    %34 = vector.extract_strided_slice %32 {offsets = [0, 32], sizes = [1, 32], strides = [1, 1]} : vector<1x128xf32> to vector<1x32xf32>
    %35 = vector.extract_strided_slice %32 {offsets = [0, 64], sizes = [1, 32], strides = [1, 1]} : vector<1x128xf32> to vector<1x32xf32>
    %36 = vector.extract_strided_slice %32 {offsets = [0, 96], sizes = [1, 32], strides = [1, 1]} : vector<1x128xf32> to vector<1x32xf32>
    %37 = arith.mulf %34, %25 : vector<1x32xf32>
    %38 = arith.mulf %33, %35 : vector<1x32xf32>
    %39 = arith.addf %37, %38 : vector<1x32xf32>
    %40 = math.tanh %39 : vector<1x32xf32>
    %41 = arith.mulf %36, %40 : vector<1x32xf32>
    %42 = arith.truncf %41 : vector<1x32xf32> to vector<1x32xbf16>
    %cst_16 = arith.constant dense<0.000000e+00> : vector<1x128xf32>
    %43 = tpu.matmul %42, %23, %cst_16 {dimension_numbers = #tpu.dot_dimension_numbers<[1], [0], [0], [1], [0, 0, 1, 1], [], []>} : vector<1x32xbf16>, vector<32x128xbf16>, vector<1x128xf32> -> vector<1x128xf32>
    %44 = vector.extract_strided_slice %16 {offsets = [1, 0], sizes = [1, 128], strides = [1, 1]} : vector<8x128xf32> to vector<1x128xf32>
    %45 = arith.addf %43, %44 : vector<1x128xf32>
    %46 = math.tanh %45 : vector<1x128xf32>
    %47 = arith.mulf %21, %46 : vector<1x128xf32>
    %48 = arith.addf %47, %22 : vector<1x128xf32>
    %49 = vector.extract_strided_slice %48 {offsets = [0, 0], sizes = [1, 32], strides = [1, 1]} : vector<1x128xf32> to vector<1x32xf32>
    %50 = vector.extract_strided_slice %48 {offsets = [0, 32], sizes = [1, 32], strides = [1, 1]} : vector<1x128xf32> to vector<1x32xf32>
    %51 = vector.extract_strided_slice %48 {offsets = [0, 64], sizes = [1, 32], strides = [1, 1]} : vector<1x128xf32> to vector<1x32xf32>
    %52 = vector.extract_strided_slice %48 {offsets = [0, 96], sizes = [1, 32], strides = [1, 1]} : vector<1x128xf32> to vector<1x32xf32>
    %53 = arith.mulf %50, %39 : vector<1x32xf32>
    %54 = arith.mulf %49, %51 : vector<1x32xf32>
    %55 = arith.addf %53, %54 : vector<1x32xf32>
    %56 = math.tanh %55 : vector<1x32xf32>
    %57 = arith.mulf %52, %56 : vector<1x32xf32>
    %58 = arith.truncf %57 : vector<1x32xf32> to vector<1x32xbf16>
    %cst_17 = arith.constant dense<0.000000e+00> : vector<1x128xf32>
    %59 = tpu.matmul %58, %23, %cst_17 {dimension_numbers = #tpu.dot_dimension_numbers<[1], [0], [0], [1], [0, 0, 1, 1], [], []>} : vector<1x32xbf16>, vector<32x128xbf16>, vector<1x128xf32> -> vector<1x128xf32>
    %60 = vector.extract_strided_slice %16 {offsets = [2, 0], sizes = [1, 128], strides = [1, 1]} : vector<8x128xf32> to vector<1x128xf32>
    %61 = arith.addf %59, %60 : vector<1x128xf32>
    %62 = math.tanh %61 : vector<1x128xf32>
    %63 = arith.mulf %21, %62 : vector<1x128xf32>
    %64 = arith.addf %63, %22 : vector<1x128xf32>
    %65 = vector.extract_strided_slice %64 {offsets = [0, 0], sizes = [1, 32], strides = [1, 1]} : vector<1x128xf32> to vector<1x32xf32>
    %66 = vector.extract_strided_slice %64 {offsets = [0, 32], sizes = [1, 32], strides = [1, 1]} : vector<1x128xf32> to vector<1x32xf32>
    %67 = vector.extract_strided_slice %64 {offsets = [0, 64], sizes = [1, 32], strides = [1, 1]} : vector<1x128xf32> to vector<1x32xf32>
    %68 = vector.extract_strided_slice %64 {offsets = [0, 96], sizes = [1, 32], strides = [1, 1]} : vector<1x128xf32> to vector<1x32xf32>
    %69 = arith.mulf %66, %55 : vector<1x32xf32>
    %70 = arith.mulf %65, %67 : vector<1x32xf32>
    %71 = arith.addf %69, %70 : vector<1x32xf32>
    %72 = math.tanh %71 : vector<1x32xf32>
    %73 = arith.mulf %68, %72 : vector<1x32xf32>
    %74 = arith.truncf %73 : vector<1x32xf32> to vector<1x32xbf16>
    %cst_18 = arith.constant dense<0.000000e+00> : vector<1x128xf32>
    %75 = tpu.matmul %74, %23, %cst_18 {dimension_numbers = #tpu.dot_dimension_numbers<[1], [0], [0], [1], [0, 0, 1, 1], [], []>} : vector<1x32xbf16>, vector<32x128xbf16>, vector<1x128xf32> -> vector<1x128xf32>
    %76 = vector.extract_strided_slice %16 {offsets = [3, 0], sizes = [1, 128], strides = [1, 1]} : vector<8x128xf32> to vector<1x128xf32>
    %77 = arith.addf %75, %76 : vector<1x128xf32>
    %78 = math.tanh %77 : vector<1x128xf32>
    %79 = arith.mulf %21, %78 : vector<1x128xf32>
    %80 = arith.addf %79, %22 : vector<1x128xf32>
    %81 = vector.extract_strided_slice %80 {offsets = [0, 0], sizes = [1, 32], strides = [1, 1]} : vector<1x128xf32> to vector<1x32xf32>
    %82 = vector.extract_strided_slice %80 {offsets = [0, 32], sizes = [1, 32], strides = [1, 1]} : vector<1x128xf32> to vector<1x32xf32>
    %83 = vector.extract_strided_slice %80 {offsets = [0, 64], sizes = [1, 32], strides = [1, 1]} : vector<1x128xf32> to vector<1x32xf32>
    %84 = vector.extract_strided_slice %80 {offsets = [0, 96], sizes = [1, 32], strides = [1, 1]} : vector<1x128xf32> to vector<1x32xf32>
    %85 = arith.mulf %82, %71 : vector<1x32xf32>
    %86 = arith.mulf %81, %83 : vector<1x32xf32>
    %87 = arith.addf %85, %86 : vector<1x32xf32>
    %88 = math.tanh %87 : vector<1x32xf32>
    %89 = arith.mulf %84, %88 : vector<1x32xf32>
    %90 = arith.truncf %89 : vector<1x32xf32> to vector<1x32xbf16>
    %cst_19 = arith.constant dense<0.000000e+00> : vector<1x128xf32>
    %91 = tpu.matmul %90, %23, %cst_19 {dimension_numbers = #tpu.dot_dimension_numbers<[1], [0], [0], [1], [0, 0, 1, 1], [], []>} : vector<1x32xbf16>, vector<32x128xbf16>, vector<1x128xf32> -> vector<1x128xf32>
    %92 = vector.extract_strided_slice %16 {offsets = [4, 0], sizes = [1, 128], strides = [1, 1]} : vector<8x128xf32> to vector<1x128xf32>
    %93 = arith.addf %91, %92 : vector<1x128xf32>
    %94 = math.tanh %93 : vector<1x128xf32>
    %95 = arith.mulf %21, %94 : vector<1x128xf32>
    %96 = arith.addf %95, %22 : vector<1x128xf32>
    %97 = vector.extract_strided_slice %96 {offsets = [0, 0], sizes = [1, 32], strides = [1, 1]} : vector<1x128xf32> to vector<1x32xf32>
    %98 = vector.extract_strided_slice %96 {offsets = [0, 32], sizes = [1, 32], strides = [1, 1]} : vector<1x128xf32> to vector<1x32xf32>
    %99 = vector.extract_strided_slice %96 {offsets = [0, 64], sizes = [1, 32], strides = [1, 1]} : vector<1x128xf32> to vector<1x32xf32>
    %100 = vector.extract_strided_slice %96 {offsets = [0, 96], sizes = [1, 32], strides = [1, 1]} : vector<1x128xf32> to vector<1x32xf32>
    %101 = arith.mulf %98, %87 : vector<1x32xf32>
    %102 = arith.mulf %97, %99 : vector<1x32xf32>
    %103 = arith.addf %101, %102 : vector<1x32xf32>
    %104 = math.tanh %103 : vector<1x32xf32>
    %105 = arith.mulf %100, %104 : vector<1x32xf32>
    %106 = arith.truncf %105 : vector<1x32xf32> to vector<1x32xbf16>
    %cst_20 = arith.constant dense<0.000000e+00> : vector<1x128xf32>
    %107 = tpu.matmul %106, %23, %cst_20 {dimension_numbers = #tpu.dot_dimension_numbers<[1], [0], [0], [1], [0, 0, 1, 1], [], []>} : vector<1x32xbf16>, vector<32x128xbf16>, vector<1x128xf32> -> vector<1x128xf32>
    %108 = vector.extract_strided_slice %16 {offsets = [5, 0], sizes = [1, 128], strides = [1, 1]} : vector<8x128xf32> to vector<1x128xf32>
    %109 = arith.addf %107, %108 : vector<1x128xf32>
    %110 = math.tanh %109 : vector<1x128xf32>
    %111 = arith.mulf %21, %110 : vector<1x128xf32>
    %112 = arith.addf %111, %22 : vector<1x128xf32>
    %113 = vector.extract_strided_slice %112 {offsets = [0, 0], sizes = [1, 32], strides = [1, 1]} : vector<1x128xf32> to vector<1x32xf32>
    %114 = vector.extract_strided_slice %112 {offsets = [0, 32], sizes = [1, 32], strides = [1, 1]} : vector<1x128xf32> to vector<1x32xf32>
    %115 = vector.extract_strided_slice %112 {offsets = [0, 64], sizes = [1, 32], strides = [1, 1]} : vector<1x128xf32> to vector<1x32xf32>
    %116 = vector.extract_strided_slice %112 {offsets = [0, 96], sizes = [1, 32], strides = [1, 1]} : vector<1x128xf32> to vector<1x32xf32>
    %117 = arith.mulf %114, %103 : vector<1x32xf32>
    %118 = arith.mulf %113, %115 : vector<1x32xf32>
    %119 = arith.addf %117, %118 : vector<1x32xf32>
    %120 = math.tanh %119 : vector<1x32xf32>
    %121 = arith.mulf %116, %120 : vector<1x32xf32>
    %122 = arith.truncf %121 : vector<1x32xf32> to vector<1x32xbf16>
    %cst_21 = arith.constant dense<0.000000e+00> : vector<1x128xf32>
    %123 = tpu.matmul %122, %23, %cst_21 {dimension_numbers = #tpu.dot_dimension_numbers<[1], [0], [0], [1], [0, 0, 1, 1], [], []>} : vector<1x32xbf16>, vector<32x128xbf16>, vector<1x128xf32> -> vector<1x128xf32>
    %124 = vector.extract_strided_slice %16 {offsets = [6, 0], sizes = [1, 128], strides = [1, 1]} : vector<8x128xf32> to vector<1x128xf32>
    %125 = arith.addf %123, %124 : vector<1x128xf32>
    %126 = math.tanh %125 : vector<1x128xf32>
    %127 = arith.mulf %21, %126 : vector<1x128xf32>
    %128 = arith.addf %127, %22 : vector<1x128xf32>
    %129 = vector.extract_strided_slice %128 {offsets = [0, 0], sizes = [1, 32], strides = [1, 1]} : vector<1x128xf32> to vector<1x32xf32>
    %130 = vector.extract_strided_slice %128 {offsets = [0, 32], sizes = [1, 32], strides = [1, 1]} : vector<1x128xf32> to vector<1x32xf32>
    %131 = vector.extract_strided_slice %128 {offsets = [0, 64], sizes = [1, 32], strides = [1, 1]} : vector<1x128xf32> to vector<1x32xf32>
    %132 = vector.extract_strided_slice %128 {offsets = [0, 96], sizes = [1, 32], strides = [1, 1]} : vector<1x128xf32> to vector<1x32xf32>
    %133 = arith.mulf %130, %119 : vector<1x32xf32>
    %134 = arith.mulf %129, %131 : vector<1x32xf32>
    %135 = arith.addf %133, %134 : vector<1x32xf32>
    %136 = math.tanh %135 : vector<1x32xf32>
    %137 = arith.mulf %132, %136 : vector<1x32xf32>
    %138 = arith.truncf %137 : vector<1x32xf32> to vector<1x32xbf16>
    %cst_22 = arith.constant dense<0.000000e+00> : vector<1x128xf32>
    %139 = tpu.matmul %138, %23, %cst_22 {dimension_numbers = #tpu.dot_dimension_numbers<[1], [0], [0], [1], [0, 0, 1, 1], [], []>} : vector<1x32xbf16>, vector<32x128xbf16>, vector<1x128xf32> -> vector<1x128xf32>
    %140 = vector.extract_strided_slice %16 {offsets = [7, 0], sizes = [1, 128], strides = [1, 1]} : vector<8x128xf32> to vector<1x128xf32>
    %141 = arith.addf %139, %140 : vector<1x128xf32>
    %142 = math.tanh %141 : vector<1x128xf32>
    %143 = arith.mulf %21, %142 : vector<1x128xf32>
    %144 = arith.addf %143, %22 : vector<1x128xf32>
    %145 = vector.extract_strided_slice %144 {offsets = [0, 0], sizes = [1, 32], strides = [1, 1]} : vector<1x128xf32> to vector<1x32xf32>
    %146 = vector.extract_strided_slice %144 {offsets = [0, 32], sizes = [1, 32], strides = [1, 1]} : vector<1x128xf32> to vector<1x32xf32>
    %147 = vector.extract_strided_slice %144 {offsets = [0, 64], sizes = [1, 32], strides = [1, 1]} : vector<1x128xf32> to vector<1x32xf32>
    %148 = vector.extract_strided_slice %144 {offsets = [0, 96], sizes = [1, 32], strides = [1, 1]} : vector<1x128xf32> to vector<1x32xf32>
    %149 = arith.mulf %146, %135 : vector<1x32xf32>
    %150 = arith.mulf %145, %147 : vector<1x32xf32>
    %151 = arith.addf %149, %150 : vector<1x32xf32>
    %152 = math.tanh %151 : vector<1x32xf32>
    %153 = arith.mulf %148, %152 : vector<1x32xf32>
    %c64_23 = arith.constant 64 : index
    %c0_24 = arith.constant 0 : index
    %154 = vector.load %arg1[%c64_23, %c0_24] : memref<144x128xbf16, #tpu.memory_space<vmem>>, vector<32x32xbf16>
    %155 = arith.truncf %153 : vector<1x32xf32> to vector<1x32xbf16>
    %cst_25 = arith.constant dense<0.000000e+00> : vector<1x32xf32>
    %156 = tpu.matmul %155, %154, %cst_25 {dimension_numbers = #tpu.dot_dimension_numbers<[1], [0], [0], [1], [0, 0, 1, 1], [], []>} : vector<1x32xbf16>, vector<32x32xbf16>, vector<1x32xf32> -> vector<1x32xf32>
    %157 = arith.addf %156, %20 : vector<1x32xf32>
    %cst_26 = arith.constant 0.000000e+00 : f32
    %158 = vector.broadcast %cst_26 : f32 to vector<1x32xf32>
    %159 = arith.maximumf %157, %158 : vector<1x32xf32>
    %c1_27 = arith.constant 1 : index
    %c32_28 = arith.constant 32 : index
    %160 = vector.load %arg2[%c1_27, %c32_28] : memref<4x128xf32, #tpu.memory_space<vmem>>, vector<1x32xf32>
    %c1_29 = arith.constant 1 : index
    %c64_30 = arith.constant 64 : index
    %161 = vector.load %arg2[%c1_29, %c64_30] : memref<4x128xf32, #tpu.memory_space<vmem>>, vector<1x32xf32>
    %162 = arith.mulf %159, %160 : vector<1x32xf32>
    %cst_31 = arith.constant dense<0.000000e+00> : vector<1xf32>
    %163 = vector.multi_reduction <add>, %162, %cst_31 [1] : vector<1x32xf32> to vector<1xf32>
    %164 = vector.shape_cast %163 : vector<1xf32> to vector<1x1xf32>
    %165 = vector.broadcast %164 : vector<1x1xf32> to vector<1x32xf32>
    %166 = arith.addf %165, %161 : vector<1x32xf32>
    %cst_32 = arith.constant 0.000000e+00 : f32
    %167 = vector.broadcast %cst_32 : f32 to vector<1x32xf32>
    %168 = tpu.concatenate %153, %151, %166, %167 in 1 : vector<1x32xf32>, vector<1x32xf32>, vector<1x32xf32>, vector<1x32xf32> -> vector<1x128xf32>
    %c0_33 = arith.constant 0 : index
    %c0_34 = arith.constant 0 : index
    %169 = vector.load %arg3[%c0_33, %c0_34] : memref<1x128xf32, #tpu.memory_space<vmem>>, vector<1x128xf32>
    tpu.vector_store %arg3[%c0_33, %c0_34], %168 {strides = array<i32>} : memref<1x128xf32, #tpu.memory_space<vmem>>, vector<1x128xf32>,
    return
  }
}

</mosaic_0001>

<bundles_post_ra>
// kernel: rnn_regression_forward.1
= control target key start
LH: loop header
LB: loop body
LE: loop exit
PB: predicated region body
PF: predicated region fallthrough
CT: control target
= control target key end

     0   :  { %8 = vsyncpa [#allocation3], 0  ;;  %s1119_s12 = smov [#allocation2]   ;;  %s1332_s0 = inlined_call_operand.vmem [shape: s32[9,1], index: 0, kind: input, shape index: {}]   ;;  %s1333_s1 = inlined_call_operand.hbm [shape: bf16[144,128], index: 1, kind: input, shape index: {}]   ;;  %s1334_s2 = inlined_call_operand.vmem [shape: f32[4,128], index: 2, kind: input, shape index: {}]   ;;  %s1335_s3 = inlined_call_operand.vmem [shape: f32[1,128], index: 3, kind: output, shape index: {}]  }
   0x1   :  { %s16_s13 = sshll.u32 %s1119_s12, 4  ;;  %s17_s13 = int_to_ptr.vmem [resolvable:$true] %s16_s13 }
   0x2   :  { %s1105_s14 = scalar_lea.vmem %s17_s13, 1152  ;;  %p1110_p1 = scmp.lt.s32.totalorder %s17_s13, %s17_s13 }
   0x3   :  { %p1106_p0 = scmp.ne.s32.totalorder %s17_s13, %s1105_s14  ;;  %p1111_p2 = scmp.lt.s32.totalorder %s1105_s14, %s1105_s14 }
   0x5   :  { %p1112_p3 = por %p1111_p2, %p1110_p1 }
   0x7   :  { %p1113_p4 = pnand %p1112_p3, %p1106_p0 }
   0x9   :  { %1116 = shalt.err (!%p1113_p4)
}
   0xa   :  { %s1120_s15 = smov 64   ;;  %s1121_s16 = smov 4  }
   0xb   :  { %22 = dma.hbm_to_vmem [thread:$0]  %s1333_s1, 1152, %s17_s13, [#allocation3], %s1120_s15, %s1120_s15, %s1121_s16  }
   0xc   :  { %1117 = dma.done.wait [#allocation3], 1152  }
   0xd   :  { %1118 = vsyncadd [#allocation3], 4294966144  ;;  %v1122_v0 = vmov 0   ;;  %v1123_v1 = vmov 0.0   ;;  %vm70_vm0 = vcmask 1040384   ;;  %v29_v2 = vld [vmem:[%s1332_s0] sm:$0xff]  ;;  %v31_v9 = vlaneseq }
   0xe   :  { %1055 = vset.pattern.permute.xlu0 %v1122_v0  ;;  %949 = vmatprep.subr.bf16.mxu0 %v1123_v1  ;;  %v30_v3 = vld [vmem:[%s1332_s0 + $0x8] sm:$0x1]  ;;  %v72_v4 = vsel %vm70_vm0, 65535, %v1122_v0  ;;  %v1056_v5 = vld [vmem:[#allocation2 + $0x40] ss:$0 sps:$4 sm:$0x11]  }
   0xf   :  { %959 = vmatprep.subr.bf16.mxu1 %v1123_v1  ;;  %34 = vperm.xlu0 %1055, %v29_v2   ;;  %v74_v6 = vand.u32 %v1056_v5, %v72_v4  ;;  %vm1124_vm1 = vmmov 0   ;;  %v1057_v7 = vld [vmem:[#allocation2 + $0x38] sm:$0xff]   ;;  %v1058_v8 = vld [vmem:[#allocation2 + $0x30] sm:$0xff]   ;;  %v32_v10 = vand.u32 127, %v31_v9  ;;  %vm66_vm4 = vcmask 269312   ;;  %v1060_v17 = vld [vmem:[#allocation2 + $0x8] sm:$0xff]  }
  0x10   :  { %955 = vmatprep.mubr.msk.bf16.mxu0 %vm1124_vm1, %v1123_v1  ;;  %963 = vmatprep.mubr.msk.bf16.mxu1 %vm1124_vm1, %v1123_v1  ;;  %v1169_v15 = vld [vmem:[#allocation2 + $0x18] sm:$0xff]   ;;  %v1175_v18 = vld [vmem:[#allocation2 + $0x10] sm:$0xff]   ;;  %v1062_v19 = vld [vmem:[#allocation2] sm:$0xff]   ;;  %vm139_vm5 = vcmask 261120   ;;  %s1125_s27 = smov 32   ;;  %s1126_s28 = smov 96  }
  0x11   :  { %950 = vmatpush3.bf16.msra.mxu0 %v74_v6  ;;  %960 = vmatpush3.bf16.msra.mxu1 %v1060_v17  ;;  %v895_v29 = vld [vmem:[%s1334_s2] ss:$0 sm:$0xff]  ;;  %v1199_v36 = vld [vmem:[%s1334_s2 + $0x2] sm:$0x1]  ;;  %v1204_v38 = vld [vmem:[%s1334_s2 + $0x3] sm:$0x1] }
  0x12   :  { %951 = vmatprep.subr.bf16.mxu0 %v1123_v1  ;;  %961 = vmatprep.subr.bf16.mxu1 %v1123_v1  ;;  %v1210_v43 = vld [vmem:[#allocation2 + $0x28] sm:$0xff]   ;;  %v1216_v49 = vld [vmem:[#allocation2 + $0x20] sm:$0xff]   ;;  %vm869_vm6 = vcmask 253952   ;;  %vm879_vm7 = vcmask 523264   ;;  %vm881_vm8 = vcmask 785408  }
  0x13   :  { %37 = vperm.xlu0 %1055, %v30_v3  }
  0x15   :  { %952 = vmatpush3.bf16.msra.mxu0 %v1057_v7  ;;  %962 = vmatpush3.bf16.msra.mxu1 %v1062_v19 }
  0x16   :  { %953 = vmatprep.subr.bf16.mxu0 %v1123_v1  ;;  %967 = vmatprep.subr.bf16.mxu1 %v1123_v1 }
  0x19   :  { %954 = vmatpush3.bf16.msra.mxu0 %v1058_v8 }
  0x1a   :  { %975 = vmatprep.subr.bf16.mxu0 %v1123_v1 }
  0x8a   :  { %v35_v11 = vpop.permute.xlu0 %34 }
  0x8b   :  { %vm39_vm2 = vcmp.eq.s32.totalorder %v35_v11, %v32_v10 }
  0x8c   :  { %v889_v13 = vsel %vm39_vm2, 1.0, %v1123_v1 }
  0x8e   :  { %v38_v12 = vpop.permute.xlu0 %37 }
  0x8f   :  { %vm40_vm3 = vcmp.eq.s32.totalorder %v38_v12, %v32_v10 }
  0x90   :  { %v890_v14 = vsel %vm40_vm3, 1.0, %v1123_v1 }
  0x91   :  { %v45_v16 = vpack.c.bf16 %v890_v14, %v889_v13 }
  0x93   :  { %956 = vmatmul.mubr.msk.bf16.vlgmr.msra.gmra.mxu0 %vm66_vm4, %v45_v16 }
  0x94   :  { %976 = vmatpush3.bf16.msra.mxu0 %v1169_v15  ;;  %979 = vmatprep.mubr.msk.bf16.mxu0 %vm1124_vm1, %v1123_v1 }
  0x95   :  { %977 = vmatprep.subr.bf16.mxu0 %v1123_v1 }
  0x98   :  { %978 = vmatpush3.bf16.msra.mxu0 %v1175_v18 }
  0x99   :  { %991 = vmatprep.subr.bf16.mxu0 %v1123_v1 }
  0x9b   :  { %980 = vmatmul.mubr.bf16.vlgmr.msra.gmra.mxu0 %v1122_v0 }
  0x9c   :  { %992 = vmatpush3.bf16.msra.mxu0 %v1169_v15  ;;  %995 = vmatprep.mubr.msk.bf16.mxu0 %vm1124_vm1, %v1123_v1 }
  0x9d   :  { %993 = vmatprep.subr.bf16.mxu0 %v1123_v1 }
  0xa0   :  { %994 = vmatpush3.bf16.msra.mxu0 %v1175_v18 }
  0xa1   :  { %1007 = vmatprep.subr.bf16.mxu0 %v1123_v1 }
 0x153   :  { %v110_v20 = vpop.f32.mrf.mxu0 }
 0x155   :  { %v957_v21 = vpop.f32.mrf.mxu0 }
 0x157   :  { %v113_v22 = vpop.f32.mrf.mxu0 }
 0x158   :  { %v117_v23 = vpack.c.bf16 %v113_v22, %v110_v20 }
 0x159   :  { %v958_v24 = vpop.f32.mrf.mxu0 }
 0x15a   :  { %964 = vmatmul.mubr.msk.bf16.vlgmr.msra.gmra.mxu1 %vm139_vm5, %v117_v23  ;;  %v189_v54 = vrot.slane %v117_v23, 4 }
 0x15b   :  { %971 = vmatprep.mubr.msk.bf16.mxu1 %vm1124_vm1, %v1123_v1  ;;  %v304_v25 = vpop.f32.mrf.mxu0 }
 0x15d   :  { %v981_v26 = vpop.f32.mrf.mxu0 }
 0x15f   :  { %v307_v27 = vpop.f32.mrf.mxu0 }
 0x161   :  { %v982_v28 = vpop.f32.mrf.mxu0 }
 0x21a   :  { %v177_v30 = vpop.f32.mrf.mxu1 }
 0x21b   :  { %v1193_v31 = vadd.f32 %v895_v29, %v177_v30 }
 0x21c   :  { %v965_v32 = vpop.f32.mrf.mxu1 }
 0x21d   :  { %v305_v33 = vadd.f32 %v304_v25, %v1193_v31  ;;  %v335_v60 = vrot.slane %v1193_v31, 1  ;;  %v404_v17 = vrot.slane %v1193_v31, 2 }
 0x21e   :  { %v180_v34 = vpop.f32.mrf.mxu1 }
 0x21f   :  { %1065 = vtanh.f32 %v305_v33 }
 0x220   :  { %v966_v35 = vpop.f32.mrf.mxu1 }
 0x22c   :  { %v1066_v37 = vpop.eup %1065 }
 0x22d   :  { %v311_v39 = vmul.f32 %v1066_v37, %v1199_v36 }
 0x22f   :  { %v312_v40 = vadd.f32 %v311_v39, %v1204_v38 }
 0x231   :  { %315 = vrot.lane.b32.xlu1 %v312_v40, %s1120_s15  ;;  %v313_v44 = vmul.f32 0.0, %v312_v40 }
 0x2a3   :  { %v316_v41 = vpop.permute.xlu1 %315 }
 0x2a4   :  { %v318_v42 = vmul.f32 %v316_v41, %v312_v40 }
 0x2a6   :  { %320 = vrot.lane.b32.xlu1 %v318_v42, %s1125_s27 }
 0x2aa   :  { %202 = vrot.lane.b32.xlu1 %v1210_v43, %s1126_s28 }
 0x318   :  { %v321_v45 = vpop.permute.xlu1 %320 }
 0x319   :  { %v323_v46 = vadd.f32 %v321_v45, %v313_v44 }
 0x31b   :  { %1067 = vtanh.f32 %v323_v46 }
 0x31c   :  { %v203_v47 = vpop.permute.xlu1 %202 }
 0x31d   :  { %968 = vmatpush3.bf16.msra.mxu1 %v203_v47 }
 0x31e   :  { %969 = vmatprep.subr.bf16.mxu1 %v1123_v1 }
 0x328   :  { %v1068_v48 = vpop.eup %1067 }
 0x329   :  { %326 = vrot.lane.b32.xlu0 %v1068_v48, %s1120_s15 }
 0x32d   :  { %200 = vrot.lane.b32.xlu0 %v1216_v49, %s1126_s28 }
 0x39b   :  { %v327_v50 = vpop.permute.xlu0 %326 }
 0x39c   :  { %v329_v51 = vmul.f32 %v327_v50, %v312_v40  ;;  %v473_v40 = vrot.slane %v1193_v31, 3 }
 0x39e   :  { %v330_v52 = vpack.c.bf16 %v329_v51, %v329_v51 }
 0x39f   :  { %v201_v53 = vpop.permute.xlu0 %200 }
 0x3a0   :  { %332 = vrot.lane.b32.xlu1 %v330_v52, %s1125_s27  ;;  %970 = vmatpush3.bf16.msra.mxu1 %v201_v53 }
 0x3a1   :  { %983 = vmatprep.subr.bf16.mxu1 %v1123_v1 }
 0x3a3   :  { %972 = vmatmul.mubr.msk.bf16.vlgmr.msra.gmra.mxu1 %vm139_vm5, %v189_v54 }
 0x3a4   :  { %984 = vmatpush3.bf16.msra.mxu1 %v1169_v15  ;;  %987 = vmatprep.mubr.msk.bf16.mxu1 %vm1124_vm1, %v1123_v1 }
 0x3a5   :  { %985 = vmatprep.subr.bf16.mxu1 %v1123_v1 }
 0x3a8   :  { %986 = vmatpush3.bf16.msra.mxu1 %v1175_v18 }
 0x3a9   :  { %999 = vmatprep.subr.bf16.mxu1 %v1123_v1 }
 0x412   :  { %v333_v55 = vpop.permute.xlu1 %332 }
 0x413   :  { %988 = vmatmul.mubr.msk.bf16.vlgmr.msra.gmra.mxu1 %vm139_vm5, %v333_v55 }
 0x414   :  { %1000 = vmatpush3.bf16.msra.mxu1 %v1169_v15  ;;  %1003 = vmatprep.mubr.msk.bf16.mxu1 %vm1124_vm1, %v1123_v1 }
 0x415   :  { %1001 = vmatprep.subr.bf16.mxu1 %v1123_v1 }
 0x418   :  { %1002 = vmatpush3.bf16.msra.mxu1 %v1175_v18 }
 0x419   :  { %1015 = vmatprep.subr.bf16.mxu1 %v1123_v1 }
 0x463   :  { %v1236_v56 = vpop.f32.mrf.mxu1 }
 0x465   :  { %v973_v57 = vpop.f32.mrf.mxu1 }
 0x467   :  { %v246_v58 = vpop.f32.mrf.mxu1 }
 0x469   :  { %v974_v59 = vpop.f32.mrf.mxu1 }
 0x4d3   :  { %v374_v61 = vpop.f32.mrf.mxu1 }
 0x4d4   :  { %v375_v62 = vadd.f32 %v374_v61, %v335_v60 }
 0x4d5   :  { %v989_v63 = vpop.f32.mrf.mxu1 }
 0x4d6   :  { %1069 = vtanh.f32 %v375_v62  ;;  %v542_v62 = vrot.slane %v1193_v31, 4 }
 0x4d7   :  { %v377_v0 = vpop.f32.mrf.mxu1 }
 0x4d9   :  { %v990_v2 = vpop.f32.mrf.mxu1 }
 0x4e3   :  { %v1070_v3 = vpop.eup %1069 }
 0x4e4   :  { %v381_v4 = vmul.f32 %v1070_v3, %v1199_v36 }
 0x4e6   :  { %v382_v5 = vadd.f32 %v381_v4, %v1204_v38 }
 0x4e8   :  { %385 = vrot.lane.b32.xlu0 %v382_v5, %s1120_s15  ;;  %v383_v8 = vmul.f32 %v382_v5, %v323_v46 }
 0x55a   :  { %v386_v6 = vpop.permute.xlu0 %385 }
 0x55b   :  { %v388_v7 = vmul.f32 %v386_v6, %v382_v5 }
 0x55d   :  { %390 = vrot.lane.b32.xlu1 %v388_v7, %s1125_s27 }
 0x5cf   :  { %v391_v9 = vpop.permute.xlu1 %390 }
 0x5d0   :  { %v393_v10 = vadd.f32 %v391_v9, %v383_v8 }
 0x5d2   :  { %1071 = vtanh.f32 %v393_v10 }
 0x5df   :  { %v1072_v11 = vpop.eup %1071 }
 0x5e0   :  { %396 = vrot.lane.b32.xlu0 %v1072_v11, %s1120_s15 }
 0x652   :  { %v397_v12 = vpop.permute.xlu0 %396 }
 0x653   :  { %v399_v13 = vmul.f32 %v397_v12, %v382_v5 }
 0x655   :  { %v400_v14 = vpack.c.bf16 %v399_v13, %v399_v13 }
 0x657   :  { %402 = vrot.lane.b32.xlu1 %v400_v14, %s1125_s27 }
 0x6c9   :  { %v403_v16 = vpop.permute.xlu1 %402 }
 0x6ca   :  { %996 = vmatmul.mubr.msk.bf16.vlgmr.msra.gmra.mxu0 %vm139_vm5, %v403_v16 }
 0x6cb   :  { %1008 = vmatpush3.bf16.msra.mxu0 %v1169_v15  ;;  %1011 = vmatprep.mubr.msk.bf16.mxu0 %vm1124_vm1, %v1123_v1 }
 0x6cc   :  { %1009 = vmatprep.subr.bf16.mxu0 %v1123_v1 }
 0x6cf   :  { %1010 = vmatpush3.bf16.msra.mxu0 %v1175_v18 }
 0x6d0   :  { %1023 = vmatprep.subr.bf16.mxu0 %v1123_v1 }
 0x78a   :  { %v443_v19 = vpop.f32.mrf.mxu0 }
 0x78b   :  { %v444_v20 = vadd.f32 %v443_v19, %v404_v17 }
 0x78c   :  { %v997_v21 = vpop.f32.mrf.mxu0 }
 0x78d   :  { %1073 = vtanh.f32 %v444_v20  ;;  %v611_v20 = vrot.slane %v1193_v31, 5 }
 0x78e   :  { %v446_v22 = vpop.f32.mrf.mxu0 }
 0x790   :  { %v998_v23 = vpop.f32.mrf.mxu0 }
 0x79a   :  { %v1074_v24 = vpop.eup %1073 }
 0x79b   :  { %v450_v25 = vmul.f32 %v1074_v24, %v1199_v36 }
 0x79d   :  { %v451_v26 = vadd.f32 %v450_v25, %v1204_v38 }
 0x79f   :  { %454 = vrot.lane.b32.xlu0 %v451_v26, %s1120_s15  ;;  %v452_v29 = vmul.f32 %v451_v26, %v393_v10 }
 0x811   :  { %v455_v27 = vpop.permute.xlu0 %454 }
 0x812   :  { %v457_v28 = vmul.f32 %v455_v27, %v451_v26 }
 0x814   :  { %459 = vrot.lane.b32.xlu1 %v457_v28, %s1125_s27 }
 0x886   :  { %v460_v30 = vpop.permute.xlu1 %459 }
 0x887   :  { %v462_v32 = vadd.f32 %v460_v30, %v452_v29 }
 0x889   :  { %1075 = vtanh.f32 %v462_v32 }
 0x896   :  { %v1076_v33 = vpop.eup %1075 }
 0x897   :  { %465 = vrot.lane.b32.xlu0 %v1076_v33, %s1120_s15 }
 0x909   :  { %v466_v34 = vpop.permute.xlu0 %465 }
 0x90a   :  { %v468_v35 = vmul.f32 %v466_v34, %v451_v26 }
 0x90c   :  { %v469_v37 = vpack.c.bf16 %v468_v35, %v468_v35 }
 0x90e   :  { %471 = vrot.lane.b32.xlu1 %v469_v37, %s1125_s27 }
 0x980   :  { %v472_v39 = vpop.permute.xlu1 %471 }
 0x981   :  { %1004 = vmatmul.mubr.msk.bf16.vlgmr.msra.gmra.mxu1 %vm139_vm5, %v472_v39 }
 0x982   :  { %1016 = vmatpush3.bf16.msra.mxu1 %v1169_v15  ;;  %1019 = vmatprep.mubr.msk.bf16.mxu1 %vm1124_vm1, %v1123_v1 }
 0x983   :  { %1017 = vmatprep.subr.bf16.mxu1 %v1123_v1 }
 0x986   :  { %1018 = vmatpush3.bf16.msra.mxu1 %v1175_v18 }
 0x987   :  { %1031 = vmatprep.subr.bf16.mxu1 %v1123_v1 }
 0xa41   :  { %v512_v41 = vpop.f32.mrf.mxu1 }
 0xa42   :  { %v513_v42 = vadd.f32 %v512_v41, %v473_v40  ;;  %v680_v40 = vrot.slane %v1193_v31, 6 }
 0xa43   :  { %v1005_v44 = vpop.f32.mrf.mxu1 }
 0xa44   :  { %1077 = vtanh.f32 %v513_v42 }
 0xa45   :  { %v515_v45 = vpop.f32.mrf.mxu1 }
 0xa47   :  { %v1006_v46 = vpop.f32.mrf.mxu1 }
 0xa51   :  { %v1078_v47 = vpop.eup %1077 }
 0xa52   :  { %v519_v48 = vmul.f32 %v1078_v47, %v1199_v36 }
 0xa54   :  { %v520_v50 = vadd.f32 %v519_v48, %v1204_v38 }
 0xa56   :  { %523 = vrot.lane.b32.xlu0 %v520_v50, %s1120_s15  ;;  %v521_v53 = vmul.f32 %v520_v50, %v462_v32 }
 0xac8   :  { %v524_v51 = vpop.permute.xlu0 %523 }
 0xac9   :  { %v526_v52 = vmul.f32 %v524_v51, %v520_v50 }
 0xacb   :  { %528 = vrot.lane.b32.xlu1 %v526_v52, %s1125_s27 }
 0xb3d   :  { %v529_v54 = vpop.permute.xlu1 %528 }
 0xb3e   :  { %v531_v55 = vadd.f32 %v529_v54, %v521_v53 }
 0xb40   :  { %1079 = vtanh.f32 %v531_v55 }
 0xb4d   :  { %v1080_v57 = vpop.eup %1079 }
 0xb4e   :  { %534 = vrot.lane.b32.xlu0 %v1080_v57, %s1120_s15 }
 0xbc0   :  { %v535_v58 = vpop.permute.xlu0 %534 }
 0xbc1   :  { %v537_v59 = vmul.f32 %v535_v58, %v520_v50 }
 0xbc3   :  { %v538_v60 = vpack.c.bf16 %v537_v59, %v537_v59  ;;  %v749_v59 = vrot.slane %v1193_v31, 7 }
 0xbc5   :  { %540 = vrot.lane.b32.xlu1 %v538_v60, %s1125_s27 }
 0xc37   :  { %v541_v61 = vpop.permute.xlu1 %540 }
 0xc38   :  { %1012 = vmatmul.mubr.msk.bf16.vlgmr.msra.gmra.mxu0 %vm139_vm5, %v541_v61 }
 0xc39   :  { %1024 = vmatpush3.bf16.msra.mxu0 %v1169_v15  ;;  %1027 = vmatprep.mubr.msk.bf16.mxu0 %vm1124_vm1, %v1123_v1 }
 0xc3a   :  { %1025 = vmatprep.subr.bf16.mxu0 %v1123_v1 }
 0xc3d   :  { %1026 = vmatpush3.bf16.msra.mxu0 %v1175_v18 }
 0xc3e   :  { %1039 = vmatprep.subr.bf16.mxu0 %v1123_v1 }
 0xcf8   :  { %v581_v63 = vpop.f32.mrf.mxu0 }
 0xcf9   :  { %v582_v0 = vadd.f32 %v581_v63, %v542_v62 }
 0xcfa   :  { %v1013_v2 = vpop.f32.mrf.mxu0 }
 0xcfb   :  { %1081 = vtanh.f32 %v582_v0 }
 0xcfc   :  { %v584_v3 = vpop.f32.mrf.mxu0 }
 0xcfe   :  { %v1014_v4 = vpop.f32.mrf.mxu0 }
 0xd08   :  { %v1082_v5 = vpop.eup %1081 }
 0xd09   :  { %v588_v6 = vmul.f32 %v1082_v5, %v1199_v36 }
 0xd0b   :  { %v589_v7 = vadd.f32 %v588_v6, %v1204_v38 }
 0xd0d   :  { %592 = vrot.lane.b32.xlu0 %v589_v7, %s1120_s15  ;;  %v590_v10 = vmul.f32 %v589_v7, %v531_v55 }
 0xd7f   :  { %v593_v8 = vpop.permute.xlu0 %592 }
 0xd80   :  { %v595_v9 = vmul.f32 %v593_v8, %v589_v7 }
 0xd82   :  { %597 = vrot.lane.b32.xlu1 %v595_v9, %s1125_s27 }
 0xdf4   :  { %v598_v11 = vpop.permute.xlu1 %597 }
 0xdf5   :  { %v600_v12 = vadd.f32 %v598_v11, %v590_v10  ;;  %v187_v10 = vld [vmem:[%s1334_s2 + $0x1] sm:$0x1] }
 0xdf7   :  { %1083 = vtanh.f32 %v600_v12 }
 0xe04   :  { %v1084_v13 = vpop.eup %1083 }
 0xe05   :  { %603 = vrot.lane.b32.xlu0 %v1084_v13, %s1120_s15  ;;  %v244_v13 = vadd.f32 %v1236_v56, %v187_v10 }
 0xe77   :  { %v604_v14 = vpop.permute.xlu0 %603 }
 0xe78   :  { %v606_v16 = vmul.f32 %v604_v14, %v589_v7 }
 0xe7a   :  { %v607_v17 = vpack.c.bf16 %v606_v16, %v606_v16 }
 0xe7c   :  { %609 = vrot.lane.b32.xlu1 %v607_v17, %s1125_s27 }
 0xeee   :  { %v610_v19 = vpop.permute.xlu1 %609 }
 0xeef   :  { %1020 = vmatmul.mubr.msk.bf16.vlgmr.msra.gmra.mxu1 %vm139_vm5, %v610_v19 }
 0xef0   :  { %1032 = vmatpush3.bf16.msra.mxu1 %v1169_v15  ;;  %1035 = vmatprep.mubr.msk.bf16.mxu1 %vm1124_vm1, %v1123_v1 }
 0xef1   :  { %1033 = vmatprep.subr.bf16.mxu1 %v1123_v1 }
 0xef4   :  { %1034 = vmatpush3.bf16.msra.mxu1 %v1175_v18 }
 0xfaf   :  { %v650_v21 = vpop.f32.mrf.mxu1 }
 0xfb0   :  { %v651_v22 = vadd.f32 %v650_v21, %v611_v20 }
 0xfb1   :  { %v1021_v23 = vpop.f32.mrf.mxu1 }
 0xfb2   :  { %1085 = vtanh.f32 %v651_v22 }
 0xfb3   :  { %v653_v24 = vpop.f32.mrf.mxu1 }
 0xfb5   :  { %v1022_v25 = vpop.f32.mrf.mxu1 }
 0xfbf   :  { %v1086_v26 = vpop.eup %1085 }
 0xfc0   :  { %v657_v27 = vmul.f32 %v1086_v26, %v1199_v36 }
 0xfc2   :  { %v658_v15 = vadd.f32 %v657_v27, %v1204_v38 }
 0xfc4   :  { %661 = vrot.lane.b32.xlu0 %v658_v15, %s1120_s15  ;;  %v659_v18 = vmul.f32 %v658_v15, %v600_v12 }
0x1036   :  { %v662_v28 = vpop.permute.xlu0 %661 }
0x1037   :  { %v664_v29 = vmul.f32 %v662_v28, %v658_v15 }
0x1039   :  { %666 = vrot.lane.b32.xlu1 %v664_v29, %s1125_s27 }
0x10ab   :  { %v667_v30 = vpop.permute.xlu1 %666 }
0x10ac   :  { %v669_v32 = vadd.f32 %v667_v30, %v659_v18 }
0x10ae   :  { %1087 = vtanh.f32 %v669_v32 }
0x10bb   :  { %v1088_v33 = vpop.eup %1087 }
0x10bc   :  { %672 = vrot.lane.b32.xlu0 %v1088_v33, %s1120_s15 }
0x112e   :  { %v673_v34 = vpop.permute.xlu0 %672 }
0x112f   :  { %v675_v35 = vmul.f32 %v673_v34, %v658_v15 }
0x1131   :  { %v676_v37 = vpack.c.bf16 %v675_v35, %v675_v35 }
0x1133   :  { %678 = vrot.lane.b32.xlu1 %v676_v37, %s1125_s27 }
0x11a5   :  { %v679_v39 = vpop.permute.xlu1 %678 }
0x11a6   :  { %1028 = vmatmul.mubr.msk.bf16.vlgmr.msra.gmra.mxu0 %vm139_vm5, %v679_v39 }
0x11a7   :  { %1040 = vmatpush3.bf16.msra.mxu0 %v1210_v43  ;;  %1043 = vmatprep.mubr.msk.bf16.mxu0 %vm1124_vm1, %v1123_v1 }
0x11a8   :  { %1041 = vmatprep.subr.bf16.mxu0 %v1123_v1 }
0x11ab   :  { %1042 = vmatpush3.bf16.msra.mxu0 %v1216_v49 }
0x1266   :  { %v719_v41 = vpop.f32.mrf.mxu0 }
0x1267   :  { %v720_v42 = vadd.f32 %v719_v41, %v680_v40 }
0x1268   :  { %v1029_v44 = vpop.f32.mrf.mxu0 }
0x1269   :  { %1089 = vtanh.f32 %v720_v42 }
0x126a   :  { %v722_v45 = vpop.f32.mrf.mxu0 }
0x126c   :  { %v1030_v46 = vpop.f32.mrf.mxu0 }
0x1276   :  { %v1090_v47 = vpop.eup %1089 }
0x1277   :  { %v726_v48 = vmul.f32 %v1090_v47, %v1199_v36 }
0x1279   :  { %v727_v43 = vadd.f32 %v726_v48, %v1204_v38 }
0x127b   :  { %730 = vrot.lane.b32.xlu0 %v727_v43, %s1120_s15  ;;  %v728_v1 = vmul.f32 %v727_v43, %v669_v32 }
0x12ed   :  { %v731_v50 = vpop.permute.xlu0 %730 }
0x12ee   :  { %v733_v51 = vmul.f32 %v731_v50, %v727_v43 }
0x12f0   :  { %735 = vrot.lane.b32.xlu1 %v733_v51, %s1125_s27 }
0x1362   :  { %v736_v49 = vpop.permute.xlu1 %735 }
0x1363   :  { %v738_v52 = vadd.f32 %v736_v49, %v728_v1 }
0x1365   :  { %1091 = vtanh.f32 %v738_v52 }
0x1372   :  { %v1092_v53 = vpop.eup %1091 }
0x1373   :  { %741 = vrot.lane.b32.xlu0 %v1092_v53, %s1120_s15 }
0x13e5   :  { %v742_v54 = vpop.permute.xlu0 %741 }
0x13e6   :  { %v744_v55 = vmul.f32 %v742_v54, %v727_v43 }
0x13e8   :  { %v745_v57 = vpack.c.bf16 %v744_v55, %v744_v55 }
0x13ea   :  { %747 = vrot.lane.b32.xlu1 %v745_v57, %s1125_s27 }
0x145c   :  { %v748_v58 = vpop.permute.xlu1 %747 }
0x145d   :  { %1036 = vmatmul.mubr.msk.bf16.vlgmr.msra.gmra.mxu1 %vm139_vm5, %v748_v58 }
0x151d   :  { %v788_v60 = vpop.f32.mrf.mxu1 }
0x151e   :  { %v789_v61 = vadd.f32 %v788_v60, %v749_v59 }
0x151f   :  { %v1037_v62 = vpop.f32.mrf.mxu1 }
0x1520   :  { %1093 = vtanh.f32 %v789_v61 }
0x1521   :  { %v791_v63 = vpop.f32.mrf.mxu1 }
0x1523   :  { %v1038_v0 = vpop.f32.mrf.mxu1 }
0x152d   :  { %v1094_v2 = vpop.eup %1093 }
0x152e   :  { %v795_v3 = vmul.f32 %v1094_v2, %v1199_v36 }
0x1530   :  { %v796_v4 = vadd.f32 %v795_v3, %v1204_v38 }
0x1532   :  { %799 = vrot.lane.b32.xlu0 %v796_v4, %s1120_s15  ;;  %v797_v7 = vmul.f32 %v796_v4, %v738_v52 }
0x15a4   :  { %v800_v5 = vpop.permute.xlu0 %799 }
0x15a5   :  { %v802_v6 = vmul.f32 %v800_v5, %v796_v4 }
0x15a7   :  { %804 = vrot.lane.b32.xlu1 %v802_v6, %s1125_s27 }
0x1619   :  { %v805_v8 = vpop.permute.xlu1 %804 }
0x161a   :  { %v807_v31 = vadd.f32 %v805_v8, %v797_v7 }
0x161c   :  { %1095 = vtanh.f32 %v807_v31 }
0x1629   :  { %v1096_v9 = vpop.eup %1095 }
0x162a   :  { %810 = vrot.lane.b32.xlu0 %v1096_v9, %s1120_s15 }
0x162e   :  { %865 = vrot.lane.b32.xlu0 %v187_v10, %s1126_s28 }
0x169c   :  { %v811_v36 = vpop.permute.xlu0 %810 }
0x169d   :  { %v813_v38 = vmul.f32 %v811_v36, %v796_v4 }
0x169f   :  { %v814_v11 = vpack.c.bf16 %v813_v38, %v813_v38  ;;  %875 = vrot.lane.b32.xlu0 %v813_v38, %s1125_s27 }
0x16a0   :  { %v866_v20 = vpop.permute.xlu0 %865 }
0x16a1   :  { %816 = vrot.lane.b32.xlu1 %v814_v11, %s1125_s27 }
0x1711   :  { %v876_v25 = vpop.permute.xlu0 %875 }
0x1712   :  { %v878_v15 = vsel %vm139_vm5, %v876_v25, %v807_v31 }
0x1713   :  { %v817_v12 = vpop.permute.xlu1 %816 }
0x1714   :  { %1044 = vmatmul.mubr.msk.bf16.vlgmr.msra.gmra.mxu0 %vm139_vm5, %v817_v12 }
0x17d4   :  { %v857_v14 = vpop.f32.mrf.mxu0 }
0x17d5   :  { %v858_v16 = vadd.f32 %v857_v14, %v244_v13 }
0x17d6   :  { %v1045_v17 = vpop.f32.mrf.mxu0 }
0x17d7   :  { %v863_v19 = vmax.f32 %v858_v16, 0.0 }
0x17d8   :  { %v860_v21 = vpop.f32.mrf.mxu0 }
0x17d9   :  { %v868_v22 = vmul.f32 %v866_v20, %v863_v19 }
0x17da   :  { %v1046_v23 = vpop.f32.mrf.mxu0 }
0x17db   :  { %v870_v24 = vsel %vm869_vm6, %v868_v22, 0.0 }
0x17dc   :  { %871 = vadd.xlane.f32.xlu1 %v870_v24 }
0x1865   :  { %v872_v26 = vpop.xlane.xlu1 %871 }
0x1866   :  { %v873_v27 = vadd.f32 %v872_v26, %v187_v10 }
0x1868   :  { %v880_v28 = vsel %vm879_vm7, %v878_v15, %v873_v27 }
0x1869   :  { %v882_v56 = vsel %vm881_vm8, %v880_v28, 0.0 }
0x186a   :  { %883 = vst [vmem:[%s1335_s3] sm:$0x1] %v882_v56 }
0x186b   :  { %888 = vsyncpa [#allocation3], 1 }

</bundles_post_ra>
